<compile_context>
chip_gen: v7x
topology: tpu7x:2x2x1
jax: 0.10.0
libtpu: 0.0.40
codegen_flags: <defaults>
</compile_context>

<pallas_src>
import math

import jax
import jax.numpy as jnp
from jax.experimental import pallas as pl

LN_EPS = 1e-5  # PyTorch nn.LayerNorm default


def handcrafted_attention_fusion(fe, hf, params, *, num_heads):
    """fe, hf: (B, E) float32.

    params: per-layer stacked tensors in the same layout the original module
    implies (weights stored pre-transposed so projections are `x @ W + b`).
    """
    del num_heads  # per-head split is a no-op when attn == v (single key)
    wq, wk, wv, bq, bk, bv, wo, bo, lnw, lnb = params
    del wq, wk, bq, bk  # provably unused under seq_len==1 eval-mode attention
    num_layers, e, _ = wv.shape
    b = fe.shape[0]

    # ---- offline algebraic folding (one-time parameter preprocessing) -----
    # o_l = hf @ (Wv_l @ Wo_l) + (bv_l @ Wo_l + bo_l)
    w_fused = jnp.einsum("lij,ljk->lik", wv, wo)                  # (L, E, E)
    b_fused = jnp.einsum("lij,ljk->lk", bv, wo) + bo[:, 0, :]     # (L, E)

    # Pack the 3 per-layer vectors (fused bias, LN gamma, LN beta) into one
    # 2-D slab -> one VMEM input instead of six.
    vec_packed = jnp.stack(
        [b_fused, lnw[:, 0, :], lnb[:, 0, :]], axis=1
    ).reshape(3 * num_layers, e)                                  # (3L, E)

    inv_e = 1.0 / float(e)

    def kernel(fe_ref, hf_ref, w_ref, vec_ref, out_ref):
        x = fe_ref[...]                                           # (B, E)
        hf_v = hf_ref[...]                                        # (B, E)
        for l in range(num_layers):                               # static unroll
            # attention output == fused value/out projection of hf
            o = jnp.dot(hf_v, w_ref[l], preferred_element_type=jnp.float32)
            o = o + vec_ref[3 * l: 3 * l + 1, :]                  # fused bias
            y = o + x                                             # residual
            # fused single-pass LayerNorm statistics
            mu = jnp.sum(y, axis=-1, keepdims=True) * inv_e
            m2 = jnp.sum(y * y, axis=-1, keepdims=True) * inv_e
            var = m2 - mu * mu
            yn = (y - mu) * jax.lax.rsqrt(var + LN_EPS)
            x = (yn * vec_ref[3 * l + 1: 3 * l + 2, :]
                 + vec_ref[3 * l + 2: 3 * l + 3, :])
        out_ref[...] = x

    return pl.pallas_call(
        kernel,
        out_shape=jax.ShapeDtypeStruct((b, e), jnp.float32),
        in_specs=[
            pl.BlockSpec((b, e), lambda: (0, 0)),
            pl.BlockSpec((b, e), lambda: (0, 0)),
            pl.BlockSpec((num_layers, e, e), lambda: (0, 0, 0)),
            pl.BlockSpec((3 * num_layers, e), lambda: (0, 0)),
        ],
        out_specs=pl.BlockSpec((b, e), lambda: (0, 0)),
    )(fe, hf, w_fused, vec_packed)


def init_params(key, embed_dim, num_layers):
    """Deterministic synthetic parameters (shapes from nn.MultiheadAttention / LayerNorm)."""
    ks = jax.random.split(key, 10)

    def nrm(k, shape, scale=0.1):
        return (scale * jax.random.normal(k, shape)).astype(jnp.float32)

    wq = nrm(ks[0], (num_layers, embed_dim, embed_dim))   # stored pre-transposed
    wk = nrm(ks[1], (num_layers, embed_dim, embed_dim))
    wv = nrm(ks[2], (num_layers, embed_dim, embed_dim))
    wo = nrm(ks[3], (num_layers, embed_dim, embed_dim))
    bq = nrm(ks[4], (num_layers, 1, embed_dim))
    bk = nrm(ks[5], (num_layers, 1, embed_dim))
    bv = nrm(ks[6], (num_layers, 1, embed_dim))
    bo = nrm(ks[7], (num_layers, 1, embed_dim))
    lnw = (1.0 + nrm(ks[8], (num_layers, 1, embed_dim))).astype(jnp.float32)
    lnb = nrm(ks[9], (num_layers, 1, embed_dim))
    return (wq, wk, wv, bq, bk, bv, wo, bo, lnw, lnb)


def reference(fe, hf, params, num_heads):
    """Plain-JAX re-implementation of the full PyTorch forward (eval mode)."""
    wq, wk, wv, bq, bk, bv, wo, bo, lnw, lnb = params
    num_layers = wq.shape[0]
    batch, e = fe.shape
    dh = e // num_heads
    x = fe[:, None, :]            # (B, 1, E)
    h = hf[:, None, :]
    for l in range(num_layers):
        residual = x
        q = x @ wq[l] + bq[l]
        k = h @ wk[l] + bk[l]
        v = h @ wv[l] + bv[l]
        qh = q.reshape(batch, 1, num_heads, dh).transpose(0, 2, 1, 3)
        kh = k.reshape(batch, 1, num_heads, dh).transpose(0, 2, 1, 3)
        vh = v.reshape(batch, 1, num_heads, dh).transpose(0, 2, 1, 3)
        scores = (qh @ kh.transpose(0, 1, 3, 2)) / math.sqrt(dh)   # (B,H,1,1)
        w = jax.nn.softmax(scores, axis=-1)                        # == 1 (single key)
        ah = w @ vh                                                # (B,H,1,Dh)
        a = ah.transpose(0, 2, 1, 3).reshape(batch, 1, e)
        o = a @ wo[l] + bo[l]
        y = o + residual
        mu = y.mean(-1, keepdims=True)
        var = ((y - mu) ** 2).mean(-1, keepdims=True)
        x = (y - mu) / jnp.sqrt(var + LN_EPS) * lnw[l] + lnb[l]
    return x[:, 0, :]


if __name__ == "__main__":
    BATCH, EMBED_DIM, NUM_HEADS, NUM_LAYERS = 8, 32, 4, 2

    key = jax.random.PRNGKey(0)
    k_p, k_fe, k_hf = jax.random.split(key, 3)
    params = init_params(k_p, EMBED_DIM, NUM_LAYERS)
    fusion_embedding = jax.random.normal(k_fe, (BATCH, EMBED_DIM), dtype=jnp.float32)
    handcrafted_features = jax.random.normal(k_hf, (BATCH, EMBED_DIM), dtype=jnp.float32)

    out = jax.block_until_ready(
        handcrafted_attention_fusion(fusion_embedding, handcrafted_features,
                                     params, num_heads=NUM_HEADS))
    ref = jax.block_until_ready(
        reference(fusion_embedding, handcrafted_features, params, NUM_HEADS))

    assert out.shape == (BATCH, EMBED_DIM)
    max_err = float(jnp.max(jnp.abs(out - ref)))
    assert max_err < 1e-2, f"kernel/reference mismatch: {max_err}"
    print("KERNEL_OK")
</pallas_src>

<mosaic_0001>
module attributes {stable_mosaic.version = 11 : i64} {
  func.func @kernel(%arg0: memref<8x32xf32, #tpu.memory_space<vmem>>, %arg1: memref<8x32xf32, #tpu.memory_space<vmem>>, %arg2: memref<2x32x32xf32, #tpu.memory_space<vmem>>, %arg3: memref<6x32xf32, #tpu.memory_space<vmem>>, %arg4: memref<8x32xf32, #tpu.memory_space<vmem>>) attributes {dimension_semantics = [], scalar_prefetch = 0 : i64, scratch_operands = 0 : i64, tpu.core_type = #tpu.core_type<tc>} {
    %c0 = arith.constant 0 : index
    %c0_0 = arith.constant 0 : index
    %0 = vector.load %arg0[%c0, %c0_0] : memref<8x32xf32, #tpu.memory_space<vmem>>, vector<8x32xf32>
    %c0_1 = arith.constant 0 : index
    %c0_2 = arith.constant 0 : index
    %1 = vector.load %arg1[%c0_1, %c0_2] : memref<8x32xf32, #tpu.memory_space<vmem>>, vector<8x32xf32>
    %c0_3 = arith.constant 0 : index
    %c0_4 = arith.constant 0 : index
    %c0_5 = arith.constant 0 : index
    %2 = vector.load %arg2[%c0_3, %c0_4, %c0_5] : memref<2x32x32xf32, #tpu.memory_space<vmem>>, vector<1x32x32xf32>
    %3 = vector.shape_cast %2 : vector<1x32x32xf32> to vector<32x32xf32>
    %cst = arith.constant dense<0.000000e+00> : vector<8x32xf32>
    %4 = tpu.matmul %1, %3, %cst {dimension_numbers = #tpu.dot_dimension_numbers<[1], [0], [0], [1], [0, 0, 1, 1], [], []>} : vector<8x32xf32>, vector<32x32xf32>, vector<8x32xf32> -> vector<8x32xf32>
    %c0_6 = arith.constant 0 : index
    %c0_7 = arith.constant 0 : index
    %5 = vector.load %arg3[%c0_6, %c0_7] : memref<6x32xf32, #tpu.memory_space<vmem>>, vector<1x32xf32>
    %6 = vector.broadcast %5 : vector<1x32xf32> to vector<8x32xf32>
    %7 = arith.addf %4, %6 : vector<8x32xf32>
    %8 = arith.addf %7, %0 : vector<8x32xf32>
    %cst_8 = arith.constant dense<0.000000e+00> : vector<8xf32>
    %9 = vector.multi_reduction <add>, %8, %cst_8 [1] : vector<8x32xf32> to vector<8xf32>
    %10 = vector.shape_cast %9 : vector<8xf32> to vector<8x1xf32>
    %cst_9 = arith.constant 3.125000e-02 : f32
    %11 = vector.broadcast %cst_9 : f32 to vector<8x1xf32>
    %12 = arith.mulf %10, %11 : vector<8x1xf32>
    %13 = arith.mulf %8, %8 : vector<8x32xf32>
    %cst_10 = arith.constant dense<0.000000e+00> : vector<8xf32>
    %14 = vector.multi_reduction <add>, %13, %cst_10 [1] : vector<8x32xf32> to vector<8xf32>
    %15 = vector.shape_cast %14 : vector<8xf32> to vector<8x1xf32>
    %cst_11 = arith.constant 3.125000e-02 : f32
    %16 = vector.broadcast %cst_11 : f32 to vector<8x1xf32>
    %17 = arith.mulf %15, %16 : vector<8x1xf32>
    %18 = arith.mulf %12, %12 : vector<8x1xf32>
    %19 = arith.subf %17, %18 : vector<8x1xf32>
    %20 = vector.broadcast %12 : vector<8x1xf32> to vector<8x32xf32>
    %21 = arith.subf %8, %20 : vector<8x32xf32>
    %cst_12 = arith.constant 9.99999974E-6 : f32
    %22 = vector.broadcast %cst_12 : f32 to vector<8x1xf32>
    %23 = arith.addf %19, %22 : vector<8x1xf32>
    %24 = math.rsqrt %23 : vector<8x1xf32>
    %25 = vector.broadcast %24 : vector<8x1xf32> to vector<8x32xf32>
    %26 = arith.mulf %21, %25 : vector<8x32xf32>
    %c1 = arith.constant 1 : index
    %c0_13 = arith.constant 0 : index
    %27 = vector.load %arg3[%c1, %c0_13] : memref<6x32xf32, #tpu.memory_space<vmem>>, vector<1x32xf32>
    %28 = vector.broadcast %27 : vector<1x32xf32> to vector<8x32xf32>
    %29 = arith.mulf %26, %28 : vector<8x32xf32>
    %c2 = arith.constant 2 : index
    %c0_14 = arith.constant 0 : index
    %30 = vector.load %arg3[%c2, %c0_14] : memref<6x32xf32, #tpu.memory_space<vmem>>, vector<1x32xf32>
    %31 = vector.broadcast %30 : vector<1x32xf32> to vector<8x32xf32>
    %32 = arith.addf %29, %31 : vector<8x32xf32>
    %c1_15 = arith.constant 1 : index
    %c0_16 = arith.constant 0 : index
    %c0_17 = arith.constant 0 : index
    %33 = vector.load %arg2[%c1_15, %c0_16, %c0_17] : memref<2x32x32xf32, #tpu.memory_space<vmem>>, vector<1x32x32xf32>
    %34 = vector.shape_cast %33 : vector<1x32x32xf32> to vector<32x32xf32>
    %cst_18 = arith.constant dense<0.000000e+00> : vector<8x32xf32>
    %35 = tpu.matmul %1, %34, %cst_18 {dimension_numbers = #tpu.dot_dimension_numbers<[1], [0], [0], [1], [0, 0, 1, 1], [], []>} : vector<8x32xf32>, vector<32x32xf32>, vector<8x32xf32> -> vector<8x32xf32>
    %c3 = arith.constant 3 : index
    %c0_19 = arith.constant 0 : index
    %36 = vector.load %arg3[%c3, %c0_19] : memref<6x32xf32, #tpu.memory_space<vmem>>, vector<1x32xf32>
    %37 = vector.broadcast %36 : vector<1x32xf32> to vector<8x32xf32>
    %38 = arith.addf %35, %37 : vector<8x32xf32>
    %39 = arith.addf %38, %32 : vector<8x32xf32>
    %cst_20 = arith.constant dense<0.000000e+00> : vector<8xf32>
    %40 = vector.multi_reduction <add>, %39, %cst_20 [1] : vector<8x32xf32> to vector<8xf32>
    %41 = vector.shape_cast %40 : vector<8xf32> to vector<8x1xf32>
    %cst_21 = arith.constant 3.125000e-02 : f32
    %42 = vector.broadcast %cst_21 : f32 to vector<8x1xf32>
    %43 = arith.mulf %41, %42 : vector<8x1xf32>
    %44 = arith.mulf %39, %39 : vector<8x32xf32>
    %cst_22 = arith.constant dense<0.000000e+00> : vector<8xf32>
    %45 = vector.multi_reduction <add>, %44, %cst_22 [1] : vector<8x32xf32> to vector<8xf32>
    %46 = vector.shape_cast %45 : vector<8xf32> to vector<8x1xf32>
    %cst_23 = arith.constant 3.125000e-02 : f32
    %47 = vector.broadcast %cst_23 : f32 to vector<8x1xf32>
    %48 = arith.mulf %46, %47 : vector<8x1xf32>
    %49 = arith.mulf %43, %43 : vector<8x1xf32>
    %50 = arith.subf %48, %49 : vector<8x1xf32>
    %51 = vector.broadcast %43 : vector<8x1xf32> to vector<8x32xf32>
    %52 = arith.subf %39, %51 : vector<8x32xf32>
    %cst_24 = arith.constant 9.99999974E-6 : f32
    %53 = vector.broadcast %cst_24 : f32 to vector<8x1xf32>
    %54 = arith.addf %50, %53 : vector<8x1xf32>
    %55 = math.rsqrt %54 : vector<8x1xf32>
    %56 = vector.broadcast %55 : vector<8x1xf32> to vector<8x32xf32>
    %57 = arith.mulf %52, %56 : vector<8x32xf32>
    %c4 = arith.constant 4 : index
    %c0_25 = arith.constant 0 : index
    %58 = vector.load %arg3[%c4, %c0_25] : memref<6x32xf32, #tpu.memory_space<vmem>>, vector<1x32xf32>
    %59 = vector.broadcast %58 : vector<1x32xf32> to vector<8x32xf32>
    %60 = arith.mulf %57, %59 : vector<8x32xf32>
    %c5 = arith.constant 5 : index
    %c0_26 = arith.constant 0 : index
    %61 = vector.load %arg3[%c5, %c0_26] : memref<6x32xf32, #tpu.memory_space<vmem>>, vector<1x32xf32>
    %62 = vector.broadcast %61 : vector<1x32xf32> to vector<8x32xf32>
    %63 = arith.addf %60, %62 : vector<8x32xf32>
    %c0_27 = arith.constant 0 : index
    %c0_28 = arith.constant 0 : index
    %64 = vector.load %arg4[%c0_27, %c0_28] : memref<8x32xf32, #tpu.memory_space<vmem>>, vector<8x32xf32>
    tpu.vector_store %arg4[%c0_27, %c0_28], %63 {strides = array<i32>} : memref<8x32xf32, #tpu.memory_space<vmem>>, vector<8x32xf32>,
    return
  }
}

</mosaic_0001>

<bundles_post_ra>
// kernel: tpu_custom_call.1
= control target key start
LH: loop header
LB: loop body
LE: loop exit
PB: predicated region body
PF: predicated region fallthrough
CT: control target
= control target key end

     0   :  { %9 = vsyncpa [#allocation3], 0  ;;  %s559_s0 = inlined_call_operand.hbm [shape: f32[8,32], index: 0, kind: input, shape index: {}]   ;;  %s560_s1 = inlined_call_operand.hbm [shape: f32[8,32], index: 1, kind: input, shape index: {}]   ;;  %s561_s2 = inlined_call_operand.hbm [shape: f32[2,32,32], index: 2, kind: input, shape index: {}]   ;;  %s562_s3 = inlined_call_operand.vmem [shape: f32[6,32], index: 3, kind: input, shape index: {}]   ;;  %s563_s4 = inlined_call_operand.hbm [shape: f32[8,32], index: 4, kind: output, shape index: {}]  }
   0x1   :  { %10 = vsyncpa [#allocation6], 0 }
   0x2   :  { %11 = vsyncpa [#allocation4], 0  ;;  %s452_s15 = smov [#allocation5]   ;;  %s453_s17 = smov [#allocation2]  }
   0x3   :  { %s28_s16 = sshll.u32 %s452_s15, 4  ;;  %s18_s18 = sshll.u32 %s453_s17, 4  ;;  %s29_s16 = int_to_ptr.vmem [resolvable:$true] %s28_s16  ;;  %s19_s18 = int_to_ptr.vmem [resolvable:$true] %s18_s18 }
   0x4   :  { %s358_s21 = scalar_lea.hbm %s560_s1, 128 }
   0x5   :  { %p359_p0 = scmp.ne.s32.totalorder %s560_s1, %s358_s21  ;;  %p362_p1 = scmp.lt.u32.totalorder %s358_s21, %s560_s1 }
   0x7   :  { %p364_p2 = pnand %p362_p1, %p359_p0 }
   0x9   :  { %367 = shalt.err (!%p364_p2)
}
   0xa   :  { %s368_s26 = scalar_lea.vmem %s29_s16, 128  ;;  %p373_p4 = scmp.lt.s32.totalorder %s29_s16, %s29_s16 }
   0xb   :  { %p369_p3 = scmp.ne.s32.totalorder %s29_s16, %s368_s26  ;;  %p374_p5 = scmp.lt.s32.totalorder %s368_s26, %s368_s26 }
   0xd   :  { %p375_p6 = por %p374_p5, %p373_p4 }
   0xf   :  { %p376_p7 = pnand %p375_p6, %p369_p3 }
  0x11   :  { %379 = shalt.err (!%p376_p7)
}
  0x12   :  { %31 = dma.hbm_to_vmem [thread:$0]  %s560_s1, 128, %s29_s16, [#allocation6]  }
  0x13   :  { %s380_s5 = scalar_lea.hbm %s559_s0, 128 }
  0x14   :  { %p381_p8 = scmp.ne.s32.totalorder %s559_s0, %s380_s5  ;;  %p384_p9 = scmp.lt.u32.totalorder %s380_s5, %s559_s0 }
  0x16   :  { %p386_p10 = pnand %p384_p9, %p381_p8 }
  0x18   :  { %389 = shalt.err (!%p386_p10)
}
  0x19   :  { %s390_s10 = scalar_lea.vmem %s19_s18, 128  ;;  %p395_p12 = scmp.lt.s32.totalorder %s19_s18, %s19_s18 }
  0x1a   :  { %p391_p11 = scmp.ne.s32.totalorder %s19_s18, %s390_s10  ;;  %p396_p13 = scmp.lt.s32.totalorder %s390_s10, %s390_s10 }
  0x1c   :  { %p397_p0 = por %p396_p13, %p395_p12 }
  0x1e   :  { %p398_p1 = pnand %p397_p0, %p391_p11 }
  0x20   :  { %401 = shalt.err (!%p398_p1)
}
  0x21   :  { %21 = dma.hbm_to_vmem [thread:$0]  %s559_s0, 128, %s19_s18, [#allocation3]  }
  0x22   :  { %s454_s12 = smov [#allocation7]   ;;  %s402_s16 = scalar_lea.hbm %s561_s2, 1024 }
  0x23   :  { %s37_s13 = sshll.u32 %s454_s12, 4  ;;  %p403_p2 = scmp.ne.s32.totalorder %s561_s2, %s402_s16  ;;  %s38_s13 = int_to_ptr.vmem [resolvable:$true] %s37_s13 }
  0x24   :  { %p406_p3 = scmp.lt.u32.totalorder %s402_s16, %s561_s2 }
  0x26   :  { %p408_p4 = pnand %p406_p3, %p403_p2 }
  0x28   :  { %411 = shalt.err (!%p408_p4)
}
  0x29   :  { %s412_s22 = scalar_lea.vmem %s38_s13, 1024  ;;  %p417_p6 = scmp.lt.s32.totalorder %s38_s13, %s38_s13 }
  0x2a   :  { %p413_p5 = scmp.ne.s32.totalorder %s38_s13, %s412_s22  ;;  %p418_p7 = scmp.lt.s32.totalorder %s412_s22, %s412_s22 }
  0x2c   :  { %p419_p8 = por %p418_p7, %p417_p6 }
  0x2e   :  { %p420_p9 = pnand %p419_p8, %p413_p5 }
  0x30   :  { %423 = shalt.err (!%p420_p9)
}
  0x31   :  { %s455_s0 = smov 128   ;;  %s456_s18 = smov 8  }
  0x32   :  { %43 = dma.hbm_to_vmem [thread:$0]  %s561_s2, 1024, %s38_s13, [#allocation6], %s455_s0, %s455_s0, %s456_s18  }
  0x33   :  { %446 = dma.done.wait [#allocation3], 128  }
  0x34   :  { %447 = vsyncadd [#allocation3], 4294967168 }
  0x35   :  { %448 = dma.done.wait [#allocation6], 1152  }
  0x36   :  { %449 = vsyncadd [#allocation6], 4294966144  ;;  %v457_v0 = vmov 0.0|0.0   ;;  %vm458_vm0 = vmmov 0   ;;  %v459_v1 = vmov 0.0   ;;  %v57_v2 = vld [vmem:[#allocation7] sm:$0xff] }
  0x37   :  { %333 = vmatprep.subr.bf16.mxu0 %v457_v0  ;;  %319 = vmatprep.mubr.msk.f32.mxu0 %vm458_vm0, %v459_v1  ;;  %v58_v3 = vld [vmem:[#allocation7 + $0x8] sm:$0xff]  ;;  %v59_v4 = vld [vmem:[#allocation7 + $0x10] sm:$0xff]  ;;  %v60_v6 = vld [vmem:[#allocation7 + $0x18] sm:$0xff]  ;;  %vm66_vm1 = vcmask 261120   ;;  %s460_s10 = smov [#allocation8]  }
  0x38   :  { %339 = vmatprep.subr.bf16.mxu1 %v457_v0  ;;  %330 = vmatprep.mubr.msk.f32.mxu1 %vm458_vm0, %v459_v1  ;;  %v334_v5 = vpack.c.bf16 %v58_v3, %v57_v2  ;;  %v169_v7 = vld [vmem:[#allocation7 + $0x20] sm:$0xff]  ;;  %v170_v8 = vld [vmem:[#allocation7 + $0x28] sm:$0xff]  ;;  %v171_v9 = vld [vmem:[#allocation7 + $0x30] sm:$0xff]  ;;  %v337_v11 = vpack.c.bf16 %v60_v6, %v59_v4  ;;  %s283_s1 = sshll.u32 %s460_s10, 4  ;;  %s284_s1 = int_to_ptr.vmem [resolvable:$true] %s283_s1 }
  0x39   :  { %v172_v10 = vld [vmem:[#allocation7 + $0x38] sm:$0xff]  ;;  %v340_v12 = vpack.c.bf16 %v170_v8, %v169_v7  ;;  %v293_v15 = vld [vmem:[%s562_s3] ss:$0 sm:$0xff]  ;;  %v295_v35 = vld [vmem:[%s562_s3 + $0x1] ss:$0 sm:$0xff]  ;;  %s424_s11 = scalar_lea.vmem %s284_s1, 128  ;;  %p429_p11 = scmp.lt.s32.totalorder %s284_s1, %s284_s1 }
  0x3a   :  { %335 = vmatpush3.bf16.msra.mxu0 %v334_v5  ;;  %v343_v13 = vpack.c.bf16 %v172_v10, %v171_v9  ;;  %v56_v14 = vld [vmem:[#allocation5] sm:$0xff]  ;;  %v55_v16 = vld [vmem:[#allocation2] sm:$0xff]  ;;  %p425_p10 = scmp.ne.s32.totalorder %s284_s1, %s424_s11  ;;  %p430_p12 = scmp.lt.s32.totalorder %s424_s11, %s424_s11 }
  0x3b   :  { %336 = vmatprep.subr.bf16.mxu0 %v457_v0  ;;  %341 = vmatpush3.bf16.msra.mxu1 %v340_v12  ;;  %v297_v36 = vld [vmem:[%s562_s3 + $0x3] ss:$0 sm:$0xff]  ;;  %v296_v38 = vld [vmem:[%s562_s3 + $0x2] ss:$0 sm:$0xff]  ;;  %v299_v55 = vld [vmem:[%s562_s3 + $0x4] ss:$0 sm:$0xff] }
  0x3c   :  { %342 = vmatprep.subr.bf16.mxu1 %v457_v0  ;;  %v300_v57 = vld [vmem:[%s562_s3 + $0x5] ss:$0 sm:$0xff]  ;;  %p431_p13 = por %p430_p12, %p429_p11 }
  0x3e   :  { %338 = vmatpush3.bf16.msra.mxu0 %v337_v11  ;;  %p432_p0 = pnand %p431_p13, %p425_p10 }
  0x3f   :  { %344 = vmatpush3.bf16.msra.mxu1 %v343_v13 }
  0x41   :  { %320 = vmatmul.mubr.msk.f32.vlgmr.msra.gmra.mrb[0].mxu0 %vm66_vm1, %v56_v14 }
  0x42   :  { %331 = vmatmul.mubr.msk.f32.vlgmr.msra.gmra.mrb[0].mxu1 %vm66_vm1, %v56_v14 }
 0x114   :  { %v136_v17 = vpop.f32.mrb[0].mxu0 }
 0x115   :  { %v137_v18 = vadd.f32 %v293_v15, %v136_v17  ;;  %v321_v19 = vpop.f32.mrb[1].mxu0  ;;  %v244_v24 = vpop.f32.mrb[0].mxu1 }
 0x116   :  { %v332_v25 = vpop.f32.mrb[1].mxu1  ;;  %v245_v40 = vadd.f32 %v297_v36, %v244_v24 }
 0x117   :  { %v140_v20 = vadd.f32 %v137_v18, %v55_v16 }
 0x119   :  { %v141_v21 = vsel %vm66_vm1, %v140_v20, 0.0  ;;  %v145_v22 = vmul.f32 %v140_v20, %v140_v20 }
 0x11a   :  { %142 = vadd.xlane.f32.xlu0 %v141_v21 }
 0x11b   :  { %v146_v23 = vsel %vm66_vm1, %v145_v22, 0.0 }
 0x11e   :  { %147 = vadd.xlane.f32.xlu0 %v146_v23 }
 0x1a7   :  { %v143_v26 = vpop.xlane.xlu0 %142 }
 0x1a8   :  { %v144_v27 = vmul.f32 0.03125, %v143_v26 }
 0x1aa   :  { %v150_v29 = vmul.f32 %v144_v27, %v144_v27  ;;  %v152_v33 = vsub.f32 %v140_v20, %v144_v27 }
 0x1ab   :  { %v148_v28 = vpop.xlane.xlu0 %147 }
 0x1ac   :  { %v149_v30 = vmul.f32 0.03125, %v148_v28 }
 0x1ae   :  { %v151_v31 = vsub.f32 %v149_v30, %v150_v29 }
 0x1b0   :  { %v153_v32 = vadd.f32 1e-05, %v151_v31 }
 0x1b2   :  { %354 = vrsqrt.f32 %v153_v32 }
 0x1bc   :  { %v355_v34 = vpop.eup %354 }
 0x1bd   :  { %v155_v37 = vmul.f32 %v355_v34, %v152_v33 }
 0x1bf   :  { %v161_v39 = vmul.f32 %v295_v35, %v155_v37 }
 0x1c1   :  { %v167_v41 = vadd.f32 %v296_v38, %v161_v39 }
 0x1c3   :  { %v248_v42 = vadd.f32 %v245_v40, %v167_v41 }
 0x1c5   :  { %v249_v43 = vsel %vm66_vm1, %v248_v42, 0.0  ;;  %v253_v44 = vmul.f32 %v248_v42, %v248_v42 }
 0x1c6   :  { %250 = vadd.xlane.f32.xlu1 %v249_v43 }
 0x1c7   :  { %v254_v45 = vsel %vm66_vm1, %v253_v44, 0.0 }
 0x1ca   :  { %255 = vadd.xlane.f32.xlu1 %v254_v45 }
 0x253   :  { %v251_v46 = vpop.xlane.xlu1 %250 }
 0x254   :  { %v252_v47 = vmul.f32 0.03125, %v251_v46 }
 0x256   :  { %v258_v49 = vmul.f32 %v252_v47, %v252_v47  ;;  %v260_v53 = vsub.f32 %v248_v42, %v252_v47 }
 0x257   :  { %v256_v48 = vpop.xlane.xlu1 %255 }
 0x258   :  { %v257_v50 = vmul.f32 0.03125, %v256_v48 }
 0x25a   :  { %v259_v51 = vsub.f32 %v257_v50, %v258_v49 }
 0x25c   :  { %v261_v52 = vadd.f32 1e-05, %v259_v51 }
 0x25e   :  { %356 = vrsqrt.f32 %v261_v52 }
 0x268   :  { %v357_v54 = vpop.eup %356 }
 0x269   :  { %v263_v56 = vmul.f32 %v357_v54, %v260_v53 }
 0x26b   :  { %v269_v58 = vmul.f32 %v299_v55, %v263_v56 }
 0x26d   :  { %v275_v59 = vadd.f32 %v300_v57, %v269_v58 }
 0x26f   :  { %276 = vst.msk [vmem:[#allocation8] sm:$0xff] %vm66_vm1, %v275_v59 }
 0x270   :  { %435 = shalt.err (!%p432_p0)
}
 0x271   :  { %s436_s14 = scalar_lea.hbm %s563_s4, 128 }
 0x272   :  { %p437_p1 = scmp.ne.s32.totalorder %s563_s4, %s436_s14  ;;  %p440_p2 = scmp.lt.u32.totalorder %s436_s14, %s563_s4 }
 0x274   :  { %p442_p3 = pnand %p440_p2, %p437_p1 }
 0x276   :  { %445 = shalt.err (!%p442_p3)
}
 0x277   :  { %286 = dma.vmem_to_hbm [thread:$0]  %s284_s1, 128, %s563_s4, [#allocation4]  }
 0x278   :  { %450 = dma.done.wait [#allocation4], 128  }
 0x279   :  { %451 = vsyncadd [#allocation4], 4294967168 }
 0x27a   :  { %290 = vsyncpa [#allocation3], 1 }
 0x27b   :  { %291 = vsyncpa [#allocation6], 1 }
 0x27c   :  { %292 = vsyncpa [#allocation4], 1 }

</bundles_post_ra>
